<compile_context>
chip_gen: v6e
topology: v6e:2x2x1
jax: 0.10.0
libtpu: 0.0.40
codegen_flags: <defaults>
</compile_context>

<pallas_src>
import functools
import math

import jax
import jax.numpy as jnp
from jax.experimental import pallas as pl
from jax.experimental.pallas import tpu as pltpu

_LANE = 128


def _round_up(n, m):
    return ((n + m - 1) // m) * m


def _sublane_multiple(dtype):
    # Minimal sublane tile multiple: 8 for 4-byte, 16 for 2-byte, 32 for 1-byte.
    itemsize = jnp.dtype(dtype).itemsize
    return max(8, 32 // max(itemsize, 1))


def _vmem_cap_bytes():
    try:
        return int(pltpu.get_tpu_info().vmem_capacity_bytes)
    except Exception:  # pragma: no cover - conservative (v7x-sized) fallback
        return 64 * 1024 * 1024


def _make_fused_mlp_kernel(n_layers, compute_dtype):
    """Kernel body: chain of `n_layers` (h @ W + b) steps on the MXU.

    Accumulation is always f32 (preferred_element_type); between layers the
    activation is cast back to `compute_dtype` (explicit precision decision).
    """

    def kernel(*refs):
        # refs = (x_ref, w1, b1, w2, b2, ..., wN, bN, o_ref)
        x_ref = refs[0]
        o_ref = refs[-1]
        h = x_ref[...].astype(compute_dtype)
        for li in range(n_layers):
            w_ref = refs[1 + 2 * li]
            b_ref = refs[2 + 2 * li]
            acc = jnp.dot(h, w_ref[...], preferred_element_type=jnp.float32)
            acc = acc + b_ref[...].astype(jnp.float32)
            h = acc.astype(compute_dtype) if li + 1 < n_layers else acc
        o_ref[...] = h.astype(o_ref.dtype)

    return kernel


@functools.partial(
    jax.jit, static_argnames=("out_features", "compute_dtype", "tile_m")
)
def net_forward(x, params, out_features, compute_dtype=jnp.float32, tile_m=None):
    """Fused MLP forward.

    x:      [M, in_features]
    params: list of (W, b) with W: [fan_in, fan_out], b: [fan_out]
    Returns [M, out_features] in x.dtype.
    """
    M, K = x.shape
    out_dtype = x.dtype
    n_layers = len(params)
    compute_dtype = jnp.dtype(compute_dtype)

    sub_m = _sublane_multiple(compute_dtype)
    K_pad = _round_up(K, _LANE)

    # K-dim zero pad only (load-bearing: padded lanes must be exact zeros so the
    # zero weight rows absorb them).  No M pad -> no extra HBM rewrite of x; the
    # ragged last batch tile is handled by Pallas partial-block masking.
    x_p = x if K_pad == K else jnp.pad(x, ((0, 0), (0, K_pad - K)))
    x_p = x_p.astype(compute_dtype)

    padded_args, w_specs = [], []
    prev_pad = K_pad
    max_width = K_pad
    resident_bytes = 0
    for w, b in params:
        fan_in, fan_out = w.shape
        n_pad = _round_up(fan_out, _LANE)
        w_p = jnp.pad(
            w.astype(compute_dtype),
            ((0, prev_pad - fan_in), (0, n_pad - fan_out)),
        )
        # Bias kept in f32 (added post-accumulation); padded entries are zero.
        b_p = jnp.pad(b.astype(jnp.float32), (0, n_pad - fan_out)).reshape(1, n_pad)
        padded_args += [w_p, b_p]
        # Constant index_map -> weights/biases stay VMEM-resident across steps.
        w_specs += [
            pl.BlockSpec((prev_pad, n_pad), lambda i: (0, 0)),
            pl.BlockSpec((1, n_pad), lambda i: (0, 0)),
        ]
        resident_bytes += prev_pad * n_pad * compute_dtype.itemsize + 8 * n_pad * 4
        max_width = max(max_width, n_pad)
        prev_pad = n_pad
    N_last_pad = prev_pad

    # Batch tile: large enough to feed the MXU, small enough that the live
    # intermediate activation (TILE_M x widest layer, f32) stays modest so it
    # doesn't force per-layer VMEM spill stores.
    if tile_m is None:
        tile_m = 256
        while tile_m > sub_m and tile_m * max_width * 4 > 4 * 1024 * 1024:
            tile_m //= 2
    tile_m = max(sub_m, _round_up(min(tile_m, _round_up(M, sub_m)), sub_m))
    grid_m = pl.cdiv(M, tile_m)

    # VMEM budget from actual padded shapes, clamped to the chip's capacity
    # (128 MiB on v5e/v6e, 64 MiB on v7x).
    act_bytes = (
        2 * tile_m * K_pad * compute_dtype.itemsize
        + 2 * tile_m * N_last_pad * jnp.dtype(out_dtype).itemsize
    )
    inter_bytes = 3 * tile_m * max_width * 4
    needed = 2 * resident_bytes + act_bytes + inter_bytes + 2 * 1024 * 1024
    cap = _vmem_cap_bytes()
    vmem_limit = int(min(max(needed, 32 * 1024 * 1024), int(cap * 0.9)))
    vmem_limit = max(vmem_limit, needed)  # never clamp below what we need

    kernel = _make_fused_mlp_kernel(n_layers, compute_dtype)

    y_p = pl.pallas_call(
        kernel,
        out_shape=jax.ShapeDtypeStruct((M, N_last_pad), out_dtype),
        grid=(grid_m,),
        in_specs=[pl.BlockSpec((tile_m, K_pad), lambda i: (i, 0))] + w_specs,
        out_specs=pl.BlockSpec((tile_m, N_last_pad), lambda i: (i, 0)),
        compiler_params=pltpu.CompilerParams(
            dimension_semantics=("parallel",),
            vmem_limit_bytes=vmem_limit,
        ),
    )(x_p, *padded_args)

    return y_p if N_last_pad == out_features else y_p[:, :out_features]


def init_params(key, in_features, features, dtype=jnp.float32):
    """Deterministic init mimicking nn.Linear shapes.

    Returns list of (W, b) where W has shape [fan_in, fan_out] (transposed vs
    PyTorch's [out, in] storage) and b has shape [fan_out].
    """
    params = []
    dims = [in_features] + list(features)
    for i in range(len(features)):
        key, kw, kb = jax.random.split(key, 3)
        fan_in, fan_out = dims[i], dims[i + 1]
        bound = 1.0 / math.sqrt(fan_in)
        w = jax.random.uniform(kw, (fan_in, fan_out), dtype, -bound, bound)
        b = jax.random.uniform(kb, (fan_out,), dtype, -bound, bound)
        params.append((w, b))
    return params


if __name__ == "__main__":
    key = jax.random.PRNGKey(0)
    batch = 8
    in_features = 32
    features = [64, 48, 16]

    k_x, k_p = jax.random.split(key)
    x = jax.random.normal(k_x, (batch, in_features), jnp.float32)
    params = init_params(k_p, in_features, features)

    # Pure-JAX reference of the same MLP chain.
    y_ref = x
    for w, b in params:
        y_ref = y_ref @ w + b

    # f32 path (exact vs. reference).
    y = net_forward(x, params, out_features=features[-1])
    jax.block_until_ready(y)
    assert y.shape == (batch, features[-1])
    assert jnp.allclose(y, y_ref, atol=1e-5, rtol=1e-5)

    # bf16 weights/activations path (MXU-native dtype), f32 accumulation.
    y_bf16 = net_forward(
        x, params, out_features=features[-1], compute_dtype=jnp.bfloat16
    )
    jax.block_until_ready(y_bf16)
    rel_err = jnp.linalg.norm(y_bf16.astype(jnp.float32) - y_ref) / jnp.linalg.norm(y_ref)
    assert rel_err < 2e-2, float(rel_err)

    print("KERNEL_OK")
</pallas_src>

<mosaic_0001>
module attributes {stable_mosaic.version = 11 : i64} {
  func.func @kernel(%arg0: i32, %arg1: memref<8x128xf32, #tpu.memory_space<vmem>>, %arg2: memref<128x128xf32, #tpu.memory_space<vmem>>, %arg3: memref<1x128xf32, #tpu.memory_space<vmem>>, %arg4: memref<128x128xf32, #tpu.memory_space<vmem>>, %arg5: memref<1x128xf32, #tpu.memory_space<vmem>>, %arg6: memref<128x128xf32, #tpu.memory_space<vmem>>, %arg7: memref<1x128xf32, #tpu.memory_space<vmem>>, %arg8: memref<8x128xf32, #tpu.memory_space<vmem>>) attributes {dimension_semantics = [#tpu.dimension_semantics<parallel>], iteration_bounds = array<i64: 1>, scalar_prefetch = 0 : i64, scratch_operands = 0 : i64, tpu.core_type = #tpu.core_type<tc>, window_params = [{transform_indices = @transform_0, window_bounds = array<i64: 8, 128>}, {pipeline_mode = #tpu.pipeline_mode<synchronous>, transform_indices = @transform_1, window_bounds = array<i64: 128, 128>}, {pipeline_mode = #tpu.pipeline_mode<synchronous>, transform_indices = @transform_2, window_bounds = array<i64: 1, 128>}, {pipeline_mode = #tpu.pipeline_mode<synchronous>, transform_indices = @transform_3, window_bounds = array<i64: 128, 128>}, {pipeline_mode = #tpu.pipeline_mode<synchronous>, transform_indices = @transform_4, window_bounds = array<i64: 1, 128>}, {pipeline_mode = #tpu.pipeline_mode<synchronous>, transform_indices = @transform_5, window_bounds = array<i64: 128, 128>}, {pipeline_mode = #tpu.pipeline_mode<synchronous>, transform_indices = @transform_6, window_bounds = array<i64: 1, 128>}, {transform_indices = @transform_7, window_bounds = array<i64: 8, 128>}]} {
    %c0 = arith.constant 0 : index
    %c0_0 = arith.constant 0 : index
    %0 = vector.load %arg1[%c0, %c0_0] : memref<8x128xf32, #tpu.memory_space<vmem>>, vector<8x128xf32>
    %c0_1 = arith.constant 0 : index
    %c0_2 = arith.constant 0 : index
    %1 = vector.load %arg2[%c0_1, %c0_2] : memref<128x128xf32, #tpu.memory_space<vmem>>, vector<128x128xf32>
    %cst = arith.constant dense<0.000000e+00> : vector<8x128xf32>
    %2 = tpu.matmul %0, %1, %cst {dimension_numbers = #tpu.dot_dimension_numbers<[1], [0], [0], [1], [0, 0, 1, 1], [], []>} : vector<8x128xf32>, vector<128x128xf32>, vector<8x128xf32> -> vector<8x128xf32>
    %c0_3 = arith.constant 0 : index
    %c0_4 = arith.constant 0 : index
    %3 = vector.load %arg3[%c0_3, %c0_4] : memref<1x128xf32, #tpu.memory_space<vmem>>, vector<1x128xf32>
    %4 = vector.broadcast %3 : vector<1x128xf32> to vector<8x128xf32>
    %5 = arith.addf %2, %4 : vector<8x128xf32>
    %c0_5 = arith.constant 0 : index
    %c0_6 = arith.constant 0 : index
    %6 = vector.load %arg4[%c0_5, %c0_6] : memref<128x128xf32, #tpu.memory_space<vmem>>, vector<128x128xf32>
    %cst_7 = arith.constant dense<0.000000e+00> : vector<8x128xf32>
    %7 = tpu.matmul %5, %6, %cst_7 {dimension_numbers = #tpu.dot_dimension_numbers<[1], [0], [0], [1], [0, 0, 1, 1], [], []>} : vector<8x128xf32>, vector<128x128xf32>, vector<8x128xf32> -> vector<8x128xf32>
    %c0_8 = arith.constant 0 : index
    %c0_9 = arith.constant 0 : index
    %8 = vector.load %arg5[%c0_8, %c0_9] : memref<1x128xf32, #tpu.memory_space<vmem>>, vector<1x128xf32>
    %9 = vector.broadcast %8 : vector<1x128xf32> to vector<8x128xf32>
    %10 = arith.addf %7, %9 : vector<8x128xf32>
    %c0_10 = arith.constant 0 : index
    %c0_11 = arith.constant 0 : index
    %11 = vector.load %arg6[%c0_10, %c0_11] : memref<128x128xf32, #tpu.memory_space<vmem>>, vector<128x128xf32>
    %cst_12 = arith.constant dense<0.000000e+00> : vector<8x128xf32>
    %12 = tpu.matmul %10, %11, %cst_12 {dimension_numbers = #tpu.dot_dimension_numbers<[1], [0], [0], [1], [0, 0, 1, 1], [], []>} : vector<8x128xf32>, vector<128x128xf32>, vector<8x128xf32> -> vector<8x128xf32>
    %c0_13 = arith.constant 0 : index
    %c0_14 = arith.constant 0 : index
    %13 = vector.load %arg7[%c0_13, %c0_14] : memref<1x128xf32, #tpu.memory_space<vmem>>, vector<1x128xf32>
    %14 = vector.broadcast %13 : vector<1x128xf32> to vector<8x128xf32>
    %15 = arith.addf %12, %14 : vector<8x128xf32>
    %c0_15 = arith.constant 0 : index
    %c0_16 = arith.constant 0 : index
    %16 = vector.load %arg8[%c0_15, %c0_16] : memref<8x128xf32, #tpu.memory_space<vmem>>, vector<8x128xf32>
    tpu.vector_store %arg8[%c0_15, %c0_16], %15 {strides = array<i32>} : memref<8x128xf32, #tpu.memory_space<vmem>>, vector<8x128xf32>,
    return
  }
  func.func @transform_0(%arg0: i32) -> (i32, i32) {
    %c0_i32 = arith.constant 0 : i32
    %c0_i32_0 = arith.constant 0 : i32
    return %arg0, %c0_i32 : i32, i32
  }
  func.func @transform_1(%arg0: i32) -> (i32, i32) {
    %c0_i32 = arith.constant 0 : i32
    %c0_i32_0 = arith.constant 0 : i32
    %c0_i32_1 = arith.constant 0 : i32
    return %c0_i32, %c0_i32_0 : i32, i32
  }
  func.func @transform_2(%arg0: i32) -> (i32, i32) {
    %c0_i32 = arith.constant 0 : i32
    %c0_i32_0 = arith.constant 0 : i32
    %c0_i32_1 = arith.constant 0 : i32
    return %c0_i32, %c0_i32_0 : i32, i32
  }
  func.func @transform_3(%arg0: i32) -> (i32, i32) {
    %c0_i32 = arith.constant 0 : i32
    %c0_i32_0 = arith.constant 0 : i32
    %c0_i32_1 = arith.constant 0 : i32
    return %c0_i32, %c0_i32_0 : i32, i32
  }
  func.func @transform_4(%arg0: i32) -> (i32, i32) {
    %c0_i32 = arith.constant 0 : i32
    %c0_i32_0 = arith.constant 0 : i32
    %c0_i32_1 = arith.constant 0 : i32
    return %c0_i32, %c0_i32_0 : i32, i32
  }
  func.func @transform_5(%arg0: i32) -> (i32, i32) {
    %c0_i32 = arith.constant 0 : i32
    %c0_i32_0 = arith.constant 0 : i32
    %c0_i32_1 = arith.constant 0 : i32
    return %c0_i32, %c0_i32_0 : i32, i32
  }
  func.func @transform_6(%arg0: i32) -> (i32, i32) {
    %c0_i32 = arith.constant 0 : i32
    %c0_i32_0 = arith.constant 0 : i32
    %c0_i32_1 = arith.constant 0 : i32
    return %c0_i32, %c0_i32_0 : i32, i32
  }
  func.func @transform_7(%arg0: i32) -> (i32, i32) {
    %c0_i32 = arith.constant 0 : i32
    %c0_i32_0 = arith.constant 0 : i32
    return %arg0, %c0_i32 : i32, i32
  }
}

</mosaic_0001>

<bundles_post_ra>
// kernel: net_forward.1
= control target key start
LH: loop header
LB: loop body
LE: loop exit
PB: predicated region body
PF: predicated region fallthrough
CT: control target
= control target key end

     0   :  { %v506_v1 = vmov 0.0   ;;  %vm507_vm0 = vmmov 0   ;;  %s762_s0 = inlined_call_operand.vmem [shape: f32[8,128], index: 0, kind: input, shape index: {}]   ;;  %s763_s1 = inlined_call_operand.vmem [shape: f32[128,128], index: 1, kind: input, shape index: {}]   ;;  %s764_s2 = inlined_call_operand.vmem [shape: f32[1,128], index: 2, kind: input, shape index: {}]   ;;  %s765_s3 = inlined_call_operand.vmem [shape: f32[128,128], index: 3, kind: input, shape index: {}]   ;;  %s766_s4 = inlined_call_operand.vmem [shape: f32[1,128], index: 4, kind: input, shape index: {}]   ;;  %s767_s5 = inlined_call_operand.vmem [shape: f32[128,128], index: 5, kind: input, shape index: {}]   ;;  %s768_s6 = inlined_call_operand.vmem [shape: f32[1,128], index: 6, kind: input, shape index: {}]   ;;  %s769_s7 = inlined_call_operand.hbm [shape: f32[8,128], index: 7, kind: output, shape index: {}]  }
   0x1   :  { %v43_v0 = vld [vmem:[%s763_s1 + $0x78] sm:$0xff]  ;;  %376 = vmatprep.subr.mxu0 %v506_v1  ;;  %v42_v2 = vld [vmem:[%s763_s1 + $0x70] sm:$0xff]  ;;  %408 = vmatprep.mubr.msk.f32.mxu0 %vm507_vm0, %v506_v1  ;;  %v41_v3 = vld [vmem:[%s763_s1 + $0x68] sm:$0xff] }
   0x2   :  { %377 = vmatpush3.msra.mxu0 %v43_v0  ;;  %411 = vmatprep.subr.mxu1 %v506_v1  ;;  %v40_v4 = vld [vmem:[%s763_s1 + $0x60] sm:$0xff]  ;;  %v136_v5 = vld [vmem:[%s765_s3 + $0x78] sm:$0xff]  ;;  %v135_v6 = vld [vmem:[%s765_s3 + $0x70] sm:$0xff] }
   0x3   :  { %378 = vmatprep.subr.mxu0 %v506_v1  ;;  %443 = vmatprep.mubr.msk.f32.mxu1 %vm507_vm0, %v506_v1  ;;  %v39_v7 = vld [vmem:[%s763_s1 + $0x58] sm:$0xff]  ;;  %v134_v8 = vld [vmem:[%s765_s3 + $0x68] sm:$0xff]  ;;  %v38_v9 = vld [vmem:[%s763_s1 + $0x50] sm:$0xff] }
   0x4   :  { %379 = vmatpush3.msra.mxu0 %v42_v2  ;;  %412 = vmatpush3.msra.mxu1 %v136_v5  ;;  %v133_v10 = vld [vmem:[%s765_s3 + $0x60] sm:$0xff] }
   0x5   :  { %380 = vmatprep.subr.mxu0 %v506_v1  ;;  %413 = vmatprep.subr.mxu1 %v506_v1 }
   0x6   :  { %381 = vmatpush3.msra.mxu0 %v41_v3  ;;  %414 = vmatpush3.msra.mxu1 %v135_v6 }
   0x7   :  { %382 = vmatprep.subr.mxu0 %v506_v1  ;;  %415 = vmatprep.subr.mxu1 %v506_v1 }
   0x8   :  { %383 = vmatpush3.msra.mxu0 %v40_v4  ;;  %416 = vmatpush3.msra.mxu1 %v134_v8 }
   0x9   :  { %384 = vmatprep.subr.mxu0 %v506_v1 }
   0xa   :  { %385 = vmatpush3.msra.mxu0 %v39_v7 }
   0xb   :  { %12 = vsyncpa [#allocation3], 0  ;;  %386 = vmatprep.subr.mxu0 %v506_v1  ;;  %v37_v11 = vld [vmem:[%s763_s1 + $0x48] sm:$0xff]  ;;  %417 = vmatprep.subr.mxu1 %v506_v1  ;;  %v132_v12 = vld [vmem:[%s765_s3 + $0x58] sm:$0xff]  ;;  %s508_s29 = smov [#allocation2]  }
   0xc   :  { %387 = vmatpush3.msra.mxu0 %v38_v9  ;;  %418 = vmatpush3.msra.mxu1 %v133_v10  ;;  %v36_v13 = vld [vmem:[%s763_s1 + $0x40] sm:$0xff]  ;;  %v131_v14 = vld [vmem:[%s765_s3 + $0x50] sm:$0xff]  ;;  %v35_v15 = vld [vmem:[%s763_s1 + $0x38] sm:$0xff]  ;;  %s314_s30 = sshll.u32 %s508_s29, 4  ;;  %s315_s30 = int_to_ptr.vmem [resolvable:$true] %s314_s30 }
   0xd   :  { %388 = vmatprep.subr.mxu0 %v506_v1  ;;  %419 = vmatprep.subr.mxu1 %v506_v1  ;;  %v130_v16 = vld [vmem:[%s765_s3 + $0x48] sm:$0xff]  ;;  %v34_v17 = vld [vmem:[%s763_s1 + $0x30] sm:$0xff]  ;;  %v129_v18 = vld [vmem:[%s765_s3 + $0x40] sm:$0xff]  ;;  %p489_p1 = scmp.lt.s32.totalorder %s315_s30, %s315_s30 }
   0xe   :  { %389 = vmatpush3.msra.mxu0 %v37_v11  ;;  %420 = vmatpush3.msra.mxu1 %v132_v12  ;;  %v33_v19 = vld [vmem:[%s763_s1 + $0x28] sm:$0xff]  ;;  %v128_v20 = vld [vmem:[%s765_s3 + $0x38] sm:$0xff]  ;;  %v32_v21 = vld [vmem:[%s763_s1 + $0x20] sm:$0xff] }
   0xf   :  { %390 = vmatprep.subr.mxu0 %v506_v1  ;;  %421 = vmatprep.subr.mxu1 %v506_v1  ;;  %v127_v22 = vld [vmem:[%s765_s3 + $0x30] sm:$0xff]  ;;  %v31_v23 = vld [vmem:[%s763_s1 + $0x18] sm:$0xff]  ;;  %v126_v24 = vld [vmem:[%s765_s3 + $0x28] sm:$0xff] }
  0x10   :  { %391 = vmatpush3.msra.mxu0 %v36_v13  ;;  %422 = vmatpush3.msra.mxu1 %v131_v14  ;;  %v30_v25 = vld [vmem:[%s763_s1 + $0x10] sm:$0xff]  ;;  %v125_v26 = vld [vmem:[%s765_s3 + $0x20] sm:$0xff]  ;;  %v29_v27 = vld [vmem:[%s763_s1 + $0x8] sm:$0xff] }
  0x11   :  { %392 = vmatprep.subr.mxu0 %v506_v1  ;;  %423 = vmatprep.subr.mxu1 %v506_v1  ;;  %v124_v28 = vld [vmem:[%s765_s3 + $0x18] sm:$0xff]  ;;  %v28_v29 = vld [vmem:[%s763_s1] sm:$0xff]  ;;  %v123_v30 = vld [vmem:[%s765_s3 + $0x10] sm:$0xff] }
  0x12   :  { %393 = vmatpush3.msra.mxu0 %v35_v15  ;;  %424 = vmatpush3.msra.mxu1 %v130_v16  ;;  %v27_v31 = vld [vmem:[%s762_s0] sm:$0xff]  ;;  %v122_v32 = vld [vmem:[%s765_s3 + $0x8] sm:$0xff]  ;;  %v229_v34 = vld [vmem:[%s767_s5 + $0x78] sm:$0xff] }
  0x13   :  { %394 = vmatprep.subr.mxu0 %v506_v1  ;;  %425 = vmatprep.subr.mxu1 %v506_v1  ;;  %v121_v33 = vld [vmem:[%s765_s3] sm:$0xff]  ;;  %v228_v35 = vld [vmem:[%s767_s5 + $0x70] sm:$0xff]  ;;  %v227_v36 = vld [vmem:[%s767_s5 + $0x68] sm:$0xff] }
  0x14   :  { %395 = vmatpush3.msra.mxu0 %v34_v17  ;;  %426 = vmatpush3.msra.mxu1 %v129_v18  ;;  %v226_v37 = vld [vmem:[%s767_s5 + $0x60] sm:$0xff]  ;;  %v225_v38 = vld [vmem:[%s767_s5 + $0x58] sm:$0xff]  ;;  %v224_v39 = vld [vmem:[%s767_s5 + $0x50] sm:$0xff] }
  0x15   :  { %396 = vmatprep.subr.mxu0 %v506_v1  ;;  %427 = vmatprep.subr.mxu1 %v506_v1  ;;  %v223_v40 = vld [vmem:[%s767_s5 + $0x48] sm:$0xff]  ;;  %v222_v41 = vld [vmem:[%s767_s5 + $0x40] sm:$0xff]  ;;  %v221_v42 = vld [vmem:[%s767_s5 + $0x38] sm:$0xff] }
  0x16   :  { %397 = vmatpush3.msra.mxu0 %v33_v19  ;;  %428 = vmatpush3.msra.mxu1 %v128_v20  ;;  %v220_v43 = vld [vmem:[%s767_s5 + $0x30] sm:$0xff]  ;;  %v219_v44 = vld [vmem:[%s767_s5 + $0x28] sm:$0xff]  ;;  %v218_v45 = vld [vmem:[%s767_s5 + $0x20] sm:$0xff] }
  0x17   :  { %398 = vmatprep.subr.mxu0 %v506_v1  ;;  %429 = vmatprep.subr.mxu1 %v506_v1  ;;  %v217_v46 = vld [vmem:[%s767_s5 + $0x18] sm:$0xff]  ;;  %v216_v47 = vld [vmem:[%s767_s5 + $0x10] sm:$0xff]  ;;  %v322_v48 = vld [vmem:[%s764_s2] ss:$0 sm:$0xff] }
  0x18   :  { %399 = vmatpush3.msra.mxu0 %v32_v21  ;;  %430 = vmatpush3.msra.mxu1 %v127_v22  ;;  %v215_v52 = vld [vmem:[%s767_s5 + $0x8] sm:$0xff]  ;;  %v214_v53 = vld [vmem:[%s767_s5] sm:$0xff]  ;;  %s484_s5 = scalar_lea.vmem %s315_s30, 128 }
  0x19   :  { %400 = vmatprep.subr.mxu0 %v506_v1  ;;  %431 = vmatprep.subr.mxu1 %v506_v1  ;;  %v323_v54 = vld [vmem:[%s766_s4] ss:$0 sm:$0xff]  ;;  %p485_p0 = scmp.ne.s32.totalorder %s315_s30, %s484_s5  ;;  %p490_p2 = scmp.lt.s32.totalorder %s484_s5, %s484_s5 }
  0x1a   :  { %401 = vmatpush3.msra.mxu0 %v31_v23  ;;  %432 = vmatpush3.msra.mxu1 %v126_v24  ;;  %v324_v58 = vld [vmem:[%s768_s6] ss:$0 sm:$0xff] }
  0x1b   :  { %402 = vmatprep.subr.mxu0 %v506_v1  ;;  %433 = vmatprep.subr.mxu1 %v506_v1  ;;  %p491_p3 = por %p490_p2, %p489_p1 }
  0x1c   :  { %403 = vmatpush3.msra.mxu0 %v30_v25  ;;  %434 = vmatpush3.msra.mxu1 %v125_v26 }
  0x1d   :  { %404 = vmatprep.subr.mxu0 %v506_v1  ;;  %435 = vmatprep.subr.mxu1 %v506_v1  ;;  %p492_p4 = pnand %p491_p3, %p485_p0 }
  0x1e   :  { %405 = vmatpush3.msra.mxu0 %v29_v27  ;;  %436 = vmatpush3.msra.mxu1 %v124_v28 }
  0x1f   :  { %406 = vmatprep.subr.mxu0 %v506_v1  ;;  %437 = vmatprep.subr.mxu1 %v506_v1 }
  0x20   :  { %407 = vmatpush3.msra.mxu0 %v28_v29  ;;  %438 = vmatpush3.msra.mxu1 %v123_v30 }
  0x21   :  { %409 = vmatmul.mubr.f32.vlgmr.msra.gmra.mxu0 %v27_v31  ;;  %439 = vmatprep.subr.mxu1 %v506_v1 }
  0x22   :  { %446 = vmatprep.subr.mxu0 %v506_v1  ;;  %478 = vmatprep.mubr.msk.f32.mxu0 %vm507_vm0, %v506_v1 }
  0x23   :  { %440 = vmatpush3.msra.mxu1 %v122_v32  ;;  %447 = vmatpush3.msra.mxu0 %v229_v34 }
  0x24   :  { %441 = vmatprep.subr.mxu1 %v506_v1  ;;  %448 = vmatprep.subr.mxu0 %v506_v1 }
  0x25   :  { %442 = vmatpush3.msra.mxu1 %v121_v33  ;;  %449 = vmatpush3.msra.mxu0 %v228_v35 }
  0x26   :  { %450 = vmatprep.subr.mxu0 %v506_v1 }
  0x27   :  { %451 = vmatpush3.msra.mxu0 %v227_v36 }
  0x28   :  { %452 = vmatprep.subr.mxu0 %v506_v1 }
  0x29   :  { %453 = vmatpush3.msra.mxu0 %v226_v37 }
  0x2a   :  { %454 = vmatprep.subr.mxu0 %v506_v1 }
  0x2b   :  { %455 = vmatpush3.msra.mxu0 %v225_v38 }
  0x2c   :  { %456 = vmatprep.subr.mxu0 %v506_v1 }
  0x2d   :  { %457 = vmatpush3.msra.mxu0 %v224_v39 }
  0x2e   :  { %458 = vmatprep.subr.mxu0 %v506_v1 }
  0x2f   :  { %459 = vmatpush3.msra.mxu0 %v223_v40 }
  0x30   :  { %460 = vmatprep.subr.mxu0 %v506_v1 }
  0x31   :  { %461 = vmatpush3.msra.mxu0 %v222_v41 }
  0x32   :  { %462 = vmatprep.subr.mxu0 %v506_v1 }
  0x33   :  { %463 = vmatpush3.msra.mxu0 %v221_v42 }
  0x34   :  { %464 = vmatprep.subr.mxu0 %v506_v1 }
  0x35   :  { %465 = vmatpush3.msra.mxu0 %v220_v43 }
  0x36   :  { %466 = vmatprep.subr.mxu0 %v506_v1 }
  0x37   :  { %467 = vmatpush3.msra.mxu0 %v219_v44 }
  0x38   :  { %468 = vmatprep.subr.mxu0 %v506_v1 }
  0x39   :  { %469 = vmatpush3.msra.mxu0 %v218_v45 }
  0x3a   :  { %470 = vmatprep.subr.mxu0 %v506_v1 }
  0x3b   :  { %471 = vmatpush3.msra.mxu0 %v217_v46 }
  0x3c   :  { %472 = vmatprep.subr.mxu0 %v506_v1 }
  0x3d   :  { %473 = vmatpush3.msra.mxu0 %v216_v47 }
  0x3e   :  { %474 = vmatprep.subr.mxu0 %v506_v1 }
  0x3f   :  { %475 = vmatpush3.msra.mxu0 %v215_v52 }
  0x40   :  { %476 = vmatprep.subr.mxu0 %v506_v1 }
  0x41   :  { %477 = vmatpush3.msra.mxu0 %v214_v53 }
  0xe1   :  { %v117_v49 = vpop.f32.mrf.mxu0 }
  0xe2   :  { %v118_v50 = vadd.f32 %v322_v48, %v117_v49 }
  0xe3   :  { %v410_v51 = vpop.f32.mrf.mxu0 }
  0xe4   :  { %444 = vmatmul.mubr.f32.vlgmr.msra.gmra.mxu1 %v118_v50 }
 0x1a4   :  { %v210_v55 = vpop.f32.mrf.mxu1 }
 0x1a5   :  { %v211_v56 = vadd.f32 %v323_v54, %v210_v55 }
 0x1a6   :  { %v445_v57 = vpop.f32.mrf.mxu1 }
 0x1a7   :  { %479 = vmatmul.mubr.f32.vlgmr.msra.gmra.mxu0 %v211_v56 }
 0x267   :  { %v303_v59 = vpop.f32.mrf.mxu0 }
 0x268   :  { %v304_v60 = vadd.f32 %v324_v58, %v303_v59 }
 0x269   :  { %v480_v61 = vpop.f32.mrf.mxu0 }
 0x26a   :  { %307 = vst [vmem:[#allocation2] sm:$0xff] %v304_v60 }
 0x26b   :  { %495 = shalt.err (!%p492_p4)
}
 0x26c   :  { %317 = dma.vmem_to_hbm [thread:$0]  %s315_s30, 128, %s769_s7, [#allocation3]  }
 0x26d   :  { %504 = dma.done.wait [#allocation3], 128  }
 0x26e   :  { %505 = vsyncadd [#allocation3], 4294967168 }
 0x26f   :  { %321 = vsyncpa [#allocation3], 1 }

</bundles_post_ra>
